<compile_context>
chip_gen: v5e
topology: v5e:2x2
jax: 0.10.0
libtpu: 0.0.40
codegen_flags: <defaults>
</compile_context>

<pallas_src>
import jax
import jax.numpy as jnp
from jax.experimental import pallas as pl
from jax.experimental.pallas import tpu as pltpu


# --------------------------------------------------------------------------
# Kernel
# --------------------------------------------------------------------------
def _pos_encode_kernel(emb_ref, out_ref):
    # emb_ref : (1, tf)   -- flattened embeddings[:L] slice for this flat tile
    # out_ref : (bt, tf)  -- lane-dense output tile covering bt batch rows
    # One sublane broadcast per vreg; the binding resource is the output DMA
    # to HBM, so nothing fancier (e.g. stride-0 reads) is needed in-kernel.
    out_ref[...] = jnp.broadcast_to(emb_ref[...], out_ref.shape)


# --------------------------------------------------------------------------
# Hardware probing (best-effort, with safe fallbacks)
# --------------------------------------------------------------------------
def _device_kind() -> str:
    try:
        return jax.devices()[0].device_kind.lower()
    except Exception:
        return ""


def _is_v7x() -> bool:
    return "v7" in _device_kind()


def _vmem_capacity_bytes() -> int:
    """Per-TensorCore VMEM capacity (128 MiB v5e/v6e, 64 MiB v7x)."""
    try:
        cap = getattr(pltpu.get_tpu_info(), "vmem_capacity_bytes", None)
        if cap:
            return int(cap)
    except Exception:
        pass
    return (64 << 20) if _is_v7x() else (128 << 20)


# --------------------------------------------------------------------------
# Tiling
# --------------------------------------------------------------------------
def _round_up(x: int, m: int) -> int:
    return ((x + m - 1) // m) * m


def _cdiv(a: int, b: int) -> int:
    return (a + b - 1) // b


def _pick_tiles(B: int, flat: int, itemsize: int, budget_bytes: int):
    """Choose (bt, tf): batch-row tile and flat-dim tile.

    Honest Mosaic VMEM accounting:
      input  block (1, tf) pads to (8, round_up(tf,128)) and is double-buffered
      output block (bt, tf) pads to (round_up(bt,8), round_up(tf,128)),
             double-buffered
    """
    flat_pad = _round_up(flat, 128)
    min_bt = B if B < 8 else 8
    min_bt_pad = _round_up(min_bt, 8)

    def vmem_bytes(bt_pad: int, tf_pad: int) -> int:
        return (2 * 8 * tf_pad + 2 * bt_pad * tf_pad) * itemsize

    if vmem_bytes(min_bt_pad, flat_pad) <= budget_bytes:
        # Preferred: full flat dim per block -> widest stores (unmasked when
        # flat % 128 == 0) and an input block that stays resident.
        tf = flat
        avail = budget_bytes - 2 * 8 * flat_pad * itemsize
        max_bt_pad = avail // (2 * flat_pad * itemsize)
        if B <= max_bt_pad:
            bt = B                                   # full batch per step
        else:
            bt = max(8, min(B, (max_bt_pad // 8) * 8))
    else:
        # Flat dim too wide for the budget even at the minimum row tile:
        # add a second grid axis tiling the flat dim in multiples of 128.
        bt = min_bt
        denom = (2 * 8 + 2 * min_bt_pad) * itemsize
        tf = max(128, (budget_bytes // denom // 128) * 128)
        if tf >= flat:
            tf = flat
    return bt, tf


def _maybe_split_rows_for_v7x(B: int, flat: int, itemsize: int,
                              bt: int, tf: int) -> int:
    """On v7x only, split a single-step grid into two byte-equal row halves so
    both TensorCores drive HBM writeback.  Never fires on 1-TC v5e/v6e."""
    if not _is_v7x():
        return bt
    n_steps = _cdiv(B, bt) * _cdiv(flat, tf)
    total_out_bytes = B * flat * itemsize
    if n_steps == 1 and B >= 16 and total_out_bytes >= (1 << 20):
        return _round_up(_cdiv(B, 2), 8)
    return bt


# --------------------------------------------------------------------------
# Public wrapper
# --------------------------------------------------------------------------
def learnable_position_encoder(embeddings: jax.Array, B: int, L: int, *,
                               bypass_bytes: int = 256 * 1024,
                               budget_bytes: int | None = None) -> jax.Array:
    """Broadcast embeddings[:L, :] to shape (B, L, E).

    bypass_bytes: outputs at/below this size skip the kernel entirely and
                  return jnp.broadcast_to (strictly faster; XLA fuses it).
    budget_bytes: optional override of the per-step VMEM budget (testing /
                  tuning); default is derived per TPU generation.
    """
    max_length, E = embeddings.shape
    assert L <= max_length

    flat = L * E
    itemsize = jnp.dtype(embeddings.dtype).itemsize
    out_bytes = B * flat * itemsize

    emb_l = embeddings[:L, :]

    # Tiny outputs: kernel-launch + ~0.35 us/step overhead dwarfs the copy.
    if out_bytes <= bypass_bytes:
        return jnp.broadcast_to(emb_l[None, :, :], (B, L, E))

    vmem_cap = _vmem_capacity_bytes()
    if budget_bytes is None:
        # ~24 MiB on v5e/v6e (128 MiB physical), ~16 MiB on v7x (64 MiB).
        budget_bytes = min(vmem_cap // 4, 24 << 20)
    vmem_limit = max(16 << 20, min(vmem_cap // 2, 64 << 20))

    bt, tf = _pick_tiles(B, flat, itemsize, budget_bytes)
    bt = _maybe_split_rows_for_v7x(B, flat, itemsize, bt, tf)

    n_row = pl.cdiv(B, bt)
    n_flat = pl.cdiv(flat, tf)

    # Contiguous, free reshape in the wrapper: (L, E) -> (1, L*E).
    emb_row = emb_l.reshape(1, flat)

    out_flat = pl.pallas_call(
        _pos_encode_kernel,
        out_shape=jax.ShapeDtypeStruct((B, flat), embeddings.dtype),
        grid_spec=pltpu.PrefetchScalarGridSpec(
            num_scalar_prefetch=0,
            grid=(n_row, n_flat),
            in_specs=[
                # Block index only depends on the flat axis; when n_flat == 1
                # the same block is revisited every step (fetched once).
                pl.BlockSpec((1, tf), lambda b, f: (0, f)),
            ],
            # Lane-dense flattened output tiles.
            out_specs=pl.BlockSpec((bt, tf), lambda b, f: (b, f)),
        ),
        compiler_params=pltpu.CompilerParams(
            dimension_semantics=("parallel", "arbitrary"),
            vmem_limit_bytes=int(vmem_limit),
        ),
    )(emb_row)

    return out_flat.reshape(B, L, E)


# --------------------------------------------------------------------------
# Self-test
# --------------------------------------------------------------------------
if __name__ == "__main__":
    # Module config (small shapes): embed_size=32, max_length=16
    embed_size = 32
    max_length = 16
    B, L = 2, 8  # batch, in-batch sequence length (L <= max_length)

    key = jax.random.PRNGKey(0)
    k_emb, k_ref = jax.random.split(key)

    # Deterministic parameter init (stands in for torch.randn in __init__).
    embeddings = jax.random.normal(k_emb, (max_length, embed_size), dtype=jnp.float32)

    # "reference" input only contributes its shape (B, L, E) to the forward.
    reference = jax.random.normal(k_ref, (B, L, embed_size), dtype=jnp.float32)

    expected = jnp.broadcast_to(embeddings[:L, :][None, :, :], (B, L, embed_size))

    # 1) Pallas kernel path (bypass disabled so the kernel is exercised).
    out = learnable_position_encoder(embeddings, B, L, bypass_bytes=0)
    out = jax.block_until_ready(out)
    assert out.shape == reference.shape
    assert out.dtype == reference.dtype
    assert jnp.array_equal(out, expected)

    # 2) Default path for tiny shapes (broadcast bypass), same semantics.
    out_bypass = jax.block_until_ready(learnable_position_encoder(embeddings, B, L))
    assert jnp.array_equal(out_bypass, expected)

    # 3) Multi-step grid (row tiling + flat tiling) exercised via a tiny
    #    VMEM-budget override; validates the 2-D BlockSpec path end-to-end.
    B2, L2 = 32, 16
    expected2 = jnp.broadcast_to(embeddings[:L2, :][None, :, :], (B2, L2, embed_size))
    out2 = learnable_position_encoder(embeddings, B2, L2,
                                      bypass_bytes=0, budget_bytes=24 * 1024)
    out2 = jax.block_until_ready(out2)
    assert out2.shape == (B2, L2, embed_size)
    assert jnp.array_equal(out2, expected2)

    print("KERNEL_OK")
</pallas_src>

<mosaic_0001>
module attributes {stable_mosaic.version = 11 : i64} {
  func.func @_pos_encode_kernel(%arg0: i32, %arg1: i32, %arg2: memref<1x256xf32, #tpu.memory_space<vmem>>, %arg3: memref<2x256xf32, #tpu.memory_space<vmem>>) attributes {dimension_semantics = [#tpu.dimension_semantics<parallel>, #tpu.dimension_semantics<arbitrary>], iteration_bounds = array<i64: 1, 1>, scalar_prefetch = 0 : i64, scratch_operands = 0 : i64, tpu.core_type = #tpu.core_type<tc>, window_params = [{transform_indices = @transform_0, window_bounds = array<i64: 1, 256>}, {transform_indices = @transform_1, window_bounds = array<i64: 2, 256>}]} {
    %c0 = arith.constant 0 : index
    %c0_0 = arith.constant 0 : index
    %0 = vector.load %arg2[%c0, %c0_0] : memref<1x256xf32, #tpu.memory_space<vmem>>, vector<1x256xf32>
    %1 = vector.shape_cast %0 : vector<1x256xf32> to vector<1x256xf32>
    %2 = vector.broadcast %1 : vector<1x256xf32> to vector<2x256xf32>
    %c0_1 = arith.constant 0 : index
    %c0_2 = arith.constant 0 : index
    %3 = vector.load %arg3[%c0_1, %c0_2] : memref<2x256xf32, #tpu.memory_space<vmem>>, vector<2x256xf32>
    tpu.vector_store %arg3[%c0_1, %c0_2], %2 {strides = array<i32>} : memref<2x256xf32, #tpu.memory_space<vmem>>, vector<2x256xf32>,
    return
  }
  func.func @transform_0(%arg0: i32, %arg1: i32) -> (i32, i32) {
    %c0_i32 = arith.constant 0 : i32
    %c0_i32_0 = arith.constant 0 : i32
    return %c0_i32, %arg1 : i32, i32
  }
  func.func @transform_1(%arg0: i32, %arg1: i32) -> (i32, i32) {
    %c0_i32 = arith.constant 0 : i32
    return %arg0, %arg1 : i32, i32
  }
}

</mosaic_0001>

<bundles_post_ra>
// kernel: tpu_custom_call.1
= control target key start
LH: loop header
LB: loop body
LE: loop exit
PB: predicated region body
PF: predicated region fallthrough
CT: control target
= control target key end

     0   :  { %6 = vsyncpa [#allocation3], 0  ;;  %s121_s0 = inlined_call_operand.hbm [shape: f32[1,256], index: 0, kind: input, shape index: {}]   ;;  %s122_s1 = inlined_call_operand.hbm [shape: f32[2,256], index: 1, kind: output, shape index: {}]  }
   0x1   :  { %7 = vsyncpa [#allocation4], 0  ;;  %s13_s8 = sshll.u32 %s121_s0, 4  ;;  %s103_s9 = smov [#allocation2]   ;;  %s14_s8 = int_to_ptr.hbm [resolvable:$true] %s13_s8 }
   0x2   :  { %s15_s10 = sshll.u32 %s103_s9, 4  ;;  %s16_s10 = int_to_ptr.vmem [resolvable:$true] %s15_s10 }
   0x3   :  { %18 = dma.hbm_to_vmem [thread:$0]  %s14_s8, 32, %s16_s10, [#allocation3]  }
   0x4   :  { %99 = dma.done.wait [#allocation3], 32  }
   0x5   :  { %100 = vsyncadd [#allocation3], 4294967264  ;;  %v23_v0 = vld [vmem:[#allocation2] sm:$0x3]  ;;  %s104_s11 = smov [#allocation5]   ;;  %s39_s15 = sshll.u32 %s122_s1, 4  ;;  %s40_s15 = int_to_ptr.hbm [resolvable:$true] %s39_s15 }
   0x6   :  { %v25_v1 = vperm.slane %v23_v0, 0  ;;  %v26_v2 = vperm.slane %v23_v0, 1  ;;  %s37_s12 = sshll.u32 %s104_s11, 4  ;;  %vm28_vm0 = vcmask 1041408   ;;  %s38_s12 = int_to_ptr.vmem [resolvable:$true] %s37_s12 }
   0x8   :  { %v27_v3 = vrot.slane %v26_v2, 6 }
   0xa   :  { %v29_v4 = vsel %vm28_vm0, %v25_v1, %v27_v3 }
   0xb   :  { %31 = vst [vmem:[#allocation5] sm:$0xf] %v29_v4 }
   0xc   :  { %42 = dma.vmem_to_hbm [thread:$0]  %s38_s12, 64, %s40_s15, [#allocation4]  }
   0xd   :  { %101 = dma.done.wait [#allocation4], 64  }
   0xe   :  { %102 = vsyncadd [#allocation4], 4294967232 }
   0xf   :  { %47 = vsyncpa [#allocation3], 1 }
  0x10   :  { %48 = vsyncpa [#allocation4], 1 }

</bundles_post_ra>
